<compile_context>
chip_gen: v5e
topology: v5e:2x2
jax: 0.10.0
libtpu: 0.0.40
codegen_flags: <defaults>
</compile_context>

<pallas_src>
import jax
import jax.numpy as jnp
from jax import lax
from jax.experimental import pallas as pl
from jax.experimental.pallas import tpu as pltpu


def _round_up(x, m):
    return ((x + m - 1) // m) * m


def _elu(v):
    # ELU(alpha=1). exp() routes to the EUP slot. exp(v)-1 (vs expm1) differs by at
    # most ~1e-7 absolute as v -> 0-, well inside tolerance; expm1 lowering avoided.
    return jnp.where(v > 0.0, v, jnp.exp(v) - 1.0)


def _block_kernel(xr_ref, halo_ref, wa_ref, wb_ref, w1_ref, w2_ref,
                  wq1_ref, wq2_ref, b_ref, o_ref):
    f32 = jnp.float32
    csp = o_ref.shape[1]          # space
    tl = o_ref.shape[2]           # pooled-length tile (multiple of 128)

    x012 = xr_ref[0].astype(f32)                       # (3*Cin, TL): [P0; P1; P2]
    rows = x012.shape[0]

    # Shifted planes: x012s[:, q] = x012[:, q+1]; the wrapped last column is patched
    # with this tile's halo column (= first plane column of the next length tile).
    l = pl.program_id(1)
    hb = halo_ref[0].astype(f32)                       # (3*Cin, num_l) resident
    lane = lax.broadcasted_iota(jnp.int32, hb.shape, 1)
    halo_col = jnp.sum(jnp.where(lane == l, hb, 0.0), axis=1, keepdims=True)
    x_shift = pltpu.roll(x012, shift=tl - 1, axis=1)   # circular left-shift by 1
    is_last = lax.broadcasted_iota(jnp.int32, (rows, tl), 1) == (tl - 1)
    x012s = jnp.where(is_last, halo_col, x_shift)      # (3*Cin, TL): [P0'; P1'; P2']

    # ---- Conv1d(k=3) (+ folded BN scale) + ELU + MaxPool1d(3) --------------------
    # Two block-Toeplitz matmuls yield the three pooling phases; the pool is an
    # elementwise max over them (ELU applied before max, as in the reference).
    partA = jnp.dot(wa_ref[...], x012, preferred_element_type=f32)    # (3*Csp, TL)
    partB = jnp.dot(wb_ref[...], x012s, preferred_element_type=f32)   # (2*Csp, TL)
    t1 = b_ref[0:csp, 0:1]
    p0 = _elu(partA[0:csp] + t1)
    p1 = _elu(partA[csp:2 * csp] + partB[0:csp] + t1)
    p2 = _elu(partA[2 * csp:3 * csp] + partB[csp:2 * csp] + t1)
    x0 = jnp.maximum(jnp.maximum(p0, p1), p2)                          # (Csp, TL)

    # ---- SEBlock: 1x1 conv (BN scale folded) -> ELU -> 1x1 conv (+ BN shift) -----
    cex = w1_ref.shape[0]
    h = _elu(jnp.dot(w1_ref[...], x0, preferred_element_type=f32)
             + b_ref[0:cex, 1:2])                                      # (2*Csp, TL)
    y = (jnp.dot(w2_ref[...], h, preferred_element_type=f32)
         + b_ref[0:csp, 2:3])                                          # (Csp, TL)

    # ---- SqueezeExcitation (AvgPool2d(1) == identity): per-position gate ---------
    sq = wq1_ref.shape[0]
    s = jnp.maximum(jnp.dot(wq1_ref[...], y, preferred_element_type=f32)
                    + b_ref[0:sq, 3:4], 0.0)                           # (Sq, TL)
    g = jnp.dot(wq2_ref[...], s, preferred_element_type=f32) + b_ref[0:csp, 4:5]
    # Numerically stable sigmoid: exp(-|g|) in (0, 1], so the approx reciprocal +
    # Newton step never sees inf (fixes NaN for strongly negative g).
    eg = jnp.exp(-jnp.abs(g))
    den = 1.0 + eg
    r = pl.reciprocal(den, approx=True)
    r = r * (2.0 - den * r)
    gate = jnp.where(g >= 0.0, r, eg * r)

    # ---- residual add + final ELU -------------------------------------------------
    o_ref[0] = _elu(gate * y + x0).astype(o_ref.dtype)


def _fold_bn(bias, gamma, beta, mean, var, eps=1e-5):
    """Fold conv bias + eval-mode BatchNorm into per-channel (scale, shift)."""
    s = gamma / jnp.sqrt(var + eps)
    t = s * (bias - mean) + beta
    return s, t


def block_forward(x, p, *, tile_l=512, stage_dtype=jnp.float32):
    """x: (N, Cin, L) float32. Returns (N, space, (L-2)//3).

    tile_l: lane tile over the pooled length (rounded to a multiple of 128). 512 is
    the HBM-roofline sweet spot; on v7x tile_l=1024 recovers a bit more as long as
    the channel count stays small (space >= 32 would start spilling vregs).
    stage_dtype: dtype of the staged phase-plane array. jnp.bfloat16 halves the
    staging write + kernel read (MXU still accumulates in f32) at ~1e-3 rel. error.
    """
    N, Cin, L = x.shape
    Csp = p["conv_w"].shape[0]            # space
    Cex = p["w1"].shape[0]                # 2 * space
    Sq = p["q1_w"].shape[0]               # squeeze_channels
    assert L >= 5, "need L >= 5 for Conv1d(k=3) + MaxPool1d(3)"
    Lp = (L - 2) // 3                     # pooled length

    # ---- fold conv biases + eval-mode BN into weights / one packed shift array ----
    s1, t1 = _fold_bn(p["conv_b"], p["bn_g"], p["bn_b"], p["bn_m"], p["bn_v"])
    s2, t2 = _fold_bn(p["b1"], p["bn1_g"], p["bn1_b"], p["bn1_m"], p["bn1_v"])
    s3, t3 = _fold_bn(p["b2"], p["bn2_g"], p["bn2_b"], p["bn2_m"], p["bn2_v"])
    w0 = p["conv_w"][:, :, 0] * s1[:, None]
    w1t = p["conv_w"][:, :, 1] * s1[:, None]
    w2t = p["conv_w"][:, :, 2] * s1[:, None]
    z = jnp.zeros_like(w0)
    # Block-Toeplitz conv weights: rows j*Csp:(j+1)*Csp produce pool phase j from
    # [P0;P1;P2] (wa) and from the one-column-shifted planes [P0';P1';P2'] (wb).
    wa = jnp.concatenate([
        jnp.concatenate([w0, w1t, w2t], axis=1),
        jnp.concatenate([z, w0, w1t], axis=1),
        jnp.concatenate([z, z, w0], axis=1)], axis=0)            # (3*Csp, 3*Cin)
    wb = jnp.concatenate([
        jnp.concatenate([w2t, z, z], axis=1),
        jnp.concatenate([w1t, w2t, z], axis=1)], axis=0)         # (2*Csp, 3*Cin)
    w1s = p["w1"] * s2[:, None]                                  # (Cex, Csp)
    w2s = p["w2"] * s3[:, None]                                  # (Csp, Cex)

    R = max(Cex, Sq)
    def padr(v):
        return jnp.pad(v, (0, R - v.shape[0]))
    bias = jnp.stack([padr(t1), padr(t2), padr(t3),
                      padr(p["q1_b"]), padr(p["q2_b"])], axis=1)  # (R, 5)

    # ---- tiling over the pooled length (lane-dense, never collapses below 128) ----
    tile_l = max(128, _round_up(tile_l, 128))
    tl = min(tile_l, _round_up(Lp, 128))
    lp_pad = _round_up(Lp, tl)
    num_l = lp_pad // tl

    # ---- stage x as three stride-3 phase planes (exactly |x| bytes, no dup) -------
    # xr rows [m*Cin:(m+1)*Cin], column p  == x[:, :, 3p + m], m = 0..2.
    # halo[:, :, l] == plane column (l+1)*tl (first column of the next length tile).
    need = 3 * (lp_pad + 1)
    xpad = jnp.pad(x, ((0, 0), (0, 0), (0, max(0, need - L))))
    xr = (xpad[:, :, :3 * lp_pad]
          .reshape(N, Cin, lp_pad, 3)
          .transpose(0, 3, 1, 2)
          .reshape(N, 3 * Cin, lp_pad)
          .astype(stage_dtype))                                   # (N, 3*Cin, lp_pad)
    halo = jnp.concatenate(
        [xpad[:, :, m + 3 * tl: m + 3 * lp_pad + 1: 3 * tl] for m in range(3)],
        axis=1).astype(stage_dtype)                               # (N, 3*Cin, num_l)

    out_pad = pl.pallas_call(
        _block_kernel,
        out_shape=jax.ShapeDtypeStruct((N, Csp, lp_pad), x.dtype),
        grid_spec=pltpu.PrefetchScalarGridSpec(
            num_scalar_prefetch=0,
            grid=(N, num_l),
            in_specs=[
                # streamed phase planes (double-buffered; depth 2 is enough here)
                pl.BlockSpec((1, 3 * Cin, tl), lambda n, l: (n, 0, l)),
                # per-batch halo columns, resident across the length axis
                pl.BlockSpec((1, 3 * Cin, num_l), lambda n, l: (n, 0, 0)),
                # small parameters: constant index_map -> fetched once, stay resident
                pl.BlockSpec((3 * Csp, 3 * Cin), lambda n, l: (0, 0)),
                pl.BlockSpec((2 * Csp, 3 * Cin), lambda n, l: (0, 0)),
                pl.BlockSpec((Cex, Csp), lambda n, l: (0, 0)),
                pl.BlockSpec((Csp, Cex), lambda n, l: (0, 0)),
                pl.BlockSpec((Sq, Csp), lambda n, l: (0, 0)),
                pl.BlockSpec((Csp, Sq), lambda n, l: (0, 0)),
                pl.BlockSpec((R, 5), lambda n, l: (0, 0)),
            ],
            out_specs=pl.BlockSpec((1, Csp, tl), lambda n, l: (n, 0, l)),
        ),
        compiler_params=pltpu.CompilerParams(
            dimension_semantics=("parallel", "parallel"),
        ),
    )(xr, halo, wa, wb, w1s, w2s, p["q1_w"], p["q2_w"], bias)

    return out_pad[:, :, :Lp]


def reference(x, p, eps=1e-5):
    """Pure-JAX reference of the PyTorch Block forward (eval-mode BN)."""
    def bn(v, g, b, m, var):
        return (g[None, :, None] * (v - m[None, :, None])
                / jnp.sqrt(var[None, :, None] + eps) + b[None, :, None])

    def elu(v):
        return jnp.where(v > 0, v, jnp.expm1(v))

    def conv1x1(v, w, b):
        return jnp.einsum("oc,ncl->nol", w, v) + b[None, :, None]

    # ConvolutionBlock
    y = (jnp.einsum("oc,ncl->nol", p["conv_w"][:, :, 0], x[:, :, 0:-2])
         + jnp.einsum("oc,ncl->nol", p["conv_w"][:, :, 1], x[:, :, 1:-1])
         + jnp.einsum("oc,ncl->nol", p["conv_w"][:, :, 2], x[:, :, 2:])
         + p["conv_b"][None, :, None])
    y = elu(bn(y, p["bn_g"], p["bn_b"], p["bn_m"], p["bn_v"]))
    n, c, lc = y.shape
    lp = lc // 3
    x0 = jnp.max(y[:, :, :3 * lp].reshape(n, c, lp, 3), axis=-1)
    # SEBlock
    h = elu(bn(conv1x1(x0, p["w1"], p["b1"]),
               p["bn1_g"], p["bn1_b"], p["bn1_m"], p["bn1_v"]))
    y2 = bn(conv1x1(h, p["w2"], p["b2"]),
            p["bn2_g"], p["bn2_b"], p["bn2_m"], p["bn2_v"])
    s = jnp.maximum(conv1x1(y2, p["q1_w"], p["q1_b"]), 0.0)
    gate = jax.nn.sigmoid(conv1x1(s, p["q2_w"], p["q2_b"]))
    se = gate * y2
    # Block residual + ELU
    return elu(se + x0)


if __name__ == "__main__":
    key = jax.random.PRNGKey(0)
    N, Cin, L = 2, 4, 50          # batch, _in, sequence length
    space, squeeze = 8, 4         # Block(_in=4, space=8, squeeze_channels=4)
    Cex = 2 * space

    keys = jax.random.split(key, 24)

    def u(k, shape, bound):
        return jax.random.uniform(k, shape, jnp.float32, -bound, bound)

    b_c = 1.0 / (Cin * 3) ** 0.5
    b_1 = 1.0 / space ** 0.5
    b_2 = 1.0 / Cex ** 0.5
    b_q = 1.0 / squeeze ** 0.5
    params = dict(
        conv_w=u(keys[0], (space, Cin, 3), b_c), conv_b=u(keys[1], (space,), b_c),
        bn_g=jax.random.uniform(keys[2], (space,), jnp.float32, 0.5, 1.5),
        bn_b=u(keys[3], (space,), 0.2), bn_m=u(keys[4], (space,), 0.2),
        bn_v=jax.random.uniform(keys[5], (space,), jnp.float32, 0.5, 1.5),
        w1=u(keys[6], (Cex, space), b_1), b1=u(keys[7], (Cex,), b_1),
        bn1_g=jax.random.uniform(keys[8], (Cex,), jnp.float32, 0.5, 1.5),
        bn1_b=u(keys[9], (Cex,), 0.2), bn1_m=u(keys[10], (Cex,), 0.2),
        bn1_v=jax.random.uniform(keys[11], (Cex,), jnp.float32, 0.5, 1.5),
        w2=u(keys[12], (space, Cex), b_2), b2=u(keys[13], (space,), b_2),
        bn2_g=jax.random.uniform(keys[14], (space,), jnp.float32, 0.5, 1.5),
        bn2_b=u(keys[15], (space,), 0.2), bn2_m=u(keys[16], (space,), 0.2),
        bn2_v=jax.random.uniform(keys[17], (space,), jnp.float32, 0.5, 1.5),
        q1_w=u(keys[18], (squeeze, space), b_1), q1_b=u(keys[19], (squeeze,), b_1),
        q2_w=u(keys[20], (space, squeeze), b_q), q2_b=u(keys[21], (space,), b_q),
    )

    # --- primary small-shape check -------------------------------------------------
    x = jax.random.normal(keys[22], (N, Cin, L), dtype=jnp.float32)
    out = jax.block_until_ready(block_forward(x, params))
    ref = reference(x, params)
    Lp = (L - 2) // 3
    assert out.shape == (N, space, Lp)
    err = float(jnp.max(jnp.abs(out - ref)))
    assert jnp.allclose(out, ref, atol=5e-3, rtol=5e-3), f"mismatch vs reference: {err}"

    # --- multi-tile check (exercises the roll + halo path across a tile boundary) --
    L2 = 602
    x2 = jax.random.normal(keys[23], (N, Cin, L2), dtype=jnp.float32)
    out2 = jax.block_until_ready(block_forward(x2, params, tile_l=128))
    ref2 = reference(x2, params)
    assert out2.shape == (N, space, (L2 - 2) // 3)
    err2 = float(jnp.max(jnp.abs(out2 - ref2)))
    assert jnp.allclose(out2, ref2, atol=5e-3, rtol=5e-3), f"multi-tile mismatch: {err2}"

    print("KERNEL_OK")
</pallas_src>

<mosaic_0001>
module attributes {stable_mosaic.version = 11 : i64} {
  func.func @_block_kernel(%arg0: i32, %arg1: i32, %arg2: memref<1x12x128xf32, #tpu.memory_space<vmem>>, %arg3: memref<1x12x1xf32, #tpu.memory_space<vmem>>, %arg4: memref<24x12xf32, #tpu.memory_space<vmem>>, %arg5: memref<16x12xf32, #tpu.memory_space<vmem>>, %arg6: memref<16x8xf32, #tpu.memory_space<vmem>>, %arg7: memref<8x16xf32, #tpu.memory_space<vmem>>, %arg8: memref<4x8xf32, #tpu.memory_space<vmem>>, %arg9: memref<8x4xf32, #tpu.memory_space<vmem>>, %arg10: memref<16x5xf32, #tpu.memory_space<vmem>>, %arg11: memref<1x8x128xf32, #tpu.memory_space<vmem>>) attributes {dimension_semantics = [#tpu.dimension_semantics<parallel>, #tpu.dimension_semantics<parallel>], iteration_bounds = array<i64: 2, 1>, scalar_prefetch = 0 : i64, scratch_operands = 0 : i64, tpu.core_type = #tpu.core_type<tc>, window_params = [{transform_indices = @transform_0, window_bounds = array<i64: 1, 12, 128>}, {transform_indices = @transform_1, window_bounds = array<i64: 1, 12, 1>}, {pipeline_mode = #tpu.pipeline_mode<synchronous>, transform_indices = @transform_2, window_bounds = array<i64: 24, 12>}, {pipeline_mode = #tpu.pipeline_mode<synchronous>, transform_indices = @transform_3, window_bounds = array<i64: 16, 12>}, {pipeline_mode = #tpu.pipeline_mode<synchronous>, transform_indices = @transform_4, window_bounds = array<i64: 16, 8>}, {pipeline_mode = #tpu.pipeline_mode<synchronous>, transform_indices = @transform_5, window_bounds = array<i64: 8, 16>}, {pipeline_mode = #tpu.pipeline_mode<synchronous>, transform_indices = @transform_6, window_bounds = array<i64: 4, 8>}, {pipeline_mode = #tpu.pipeline_mode<synchronous>, transform_indices = @transform_7, window_bounds = array<i64: 8, 4>}, {pipeline_mode = #tpu.pipeline_mode<synchronous>, transform_indices = @transform_8, window_bounds = array<i64: 16, 5>}, {transform_indices = @transform_9, window_bounds = array<i64: 1, 8, 128>}]} {
    %c0 = arith.constant 0 : index
    %c0_0 = arith.constant 0 : index
    %c0_1 = arith.constant 0 : index
    %0 = vector.load %arg2[%c0, %c0_0, %c0_1] : memref<1x12x128xf32, #tpu.memory_space<vmem>>, vector<1x12x128xf32>
    %1 = vector.shape_cast %0 : vector<1x12x128xf32> to vector<12x128xf32>
    %c0_2 = arith.constant 0 : index
    %c0_3 = arith.constant 0 : index
    %c0_4 = arith.constant 0 : index
    %2 = vector.load %arg3[%c0_2, %c0_3, %c0_4] : memref<1x12x1xf32, #tpu.memory_space<vmem>>, vector<1x12x1xf32>
    %3 = vector.shape_cast %2 : vector<1x12x1xf32> to vector<12x1xf32>
    %4 = tpu.iota {dimensions = array<i32: 1>} : vector<12x1xi32>
    %5 = vector.broadcast %arg1 : i32 to vector<12x1xi32>
    %6 = arith.cmpi eq, %4, %5 : vector<12x1xi32>
    %cst = arith.constant 0.000000e+00 : f32
    %7 = vector.broadcast %cst : f32 to vector<12x1xf32>
    %8 = arith.select %6, %3, %7 : vector<12x1xi1>, vector<12x1xf32>
    %cst_5 = arith.constant dense<0.000000e+00> : vector<12xf32>
    %9 = vector.multi_reduction <add>, %8, %cst_5 [1] : vector<12x1xf32> to vector<12xf32>
    %10 = vector.shape_cast %9 : vector<12xf32> to vector<12x1xf32>
    %c127_i32 = arith.constant 127 : i32
    %11 = tpu.dynamic_rotate %1 by %c127_i32 dim 1 : vector<12x128xf32>, i32 -> vector<12x128xf32>
    %12 = tpu.iota {dimensions = array<i32: 1>} : vector<12x128xi32>
    %c127_i32_6 = arith.constant 127 : i32
    %13 = vector.broadcast %c127_i32_6 : i32 to vector<12x128xi32>
    %14 = arith.cmpi eq, %12, %13 : vector<12x128xi32>
    %15 = vector.shape_cast %10 : vector<12x1xf32> to vector<12x1xf32>
    %16 = vector.broadcast %15 : vector<12x1xf32> to vector<12x128xf32>
    %17 = arith.select %14, %16, %11 : vector<12x128xi1>, vector<12x128xf32>
    %c0_7 = arith.constant 0 : index
    %c0_8 = arith.constant 0 : index
    %18 = vector.load %arg4[%c0_7, %c0_8] : memref<24x12xf32, #tpu.memory_space<vmem>>, vector<24x12xf32>
    %cst_9 = arith.constant dense<0.000000e+00> : vector<24x128xf32>
    %19 = tpu.matmul %18, %1, %cst_9 {dimension_numbers = #tpu.dot_dimension_numbers<[1], [0], [0], [1], [0, 0, 1, 1], [], []>} : vector<24x12xf32>, vector<12x128xf32>, vector<24x128xf32> -> vector<24x128xf32>
    %c0_10 = arith.constant 0 : index
    %c0_11 = arith.constant 0 : index
    %20 = vector.load %arg5[%c0_10, %c0_11] : memref<16x12xf32, #tpu.memory_space<vmem>>, vector<16x12xf32>
    %cst_12 = arith.constant dense<0.000000e+00> : vector<16x128xf32>
    %21 = tpu.matmul %20, %17, %cst_12 {dimension_numbers = #tpu.dot_dimension_numbers<[1], [0], [0], [1], [0, 0, 1, 1], [], []>} : vector<16x12xf32>, vector<12x128xf32>, vector<16x128xf32> -> vector<16x128xf32>
    %c0_13 = arith.constant 0 : index
    %c0_14 = arith.constant 0 : index
    %22 = vector.load %arg10[%c0_13, %c0_14] : memref<16x5xf32, #tpu.memory_space<vmem>>, vector<8x1xf32>
    %23 = vector.extract_strided_slice %19 {offsets = [0, 0], sizes = [8, 128], strides = [1, 1]} : vector<24x128xf32> to vector<8x128xf32>
    %24 = vector.broadcast %22 : vector<8x1xf32> to vector<8x128xf32>
    %25 = arith.addf %23, %24 : vector<8x128xf32>
    %cst_15 = arith.constant 0.000000e+00 : f32
    %26 = vector.broadcast %cst_15 : f32 to vector<8x128xf32>
    %27 = arith.cmpf ogt, %25, %26 : vector<8x128xf32>
    %28 = math.exp %25 : vector<8x128xf32>
    %cst_16 = arith.constant 1.000000e+00 : f32
    %29 = vector.broadcast %cst_16 : f32 to vector<8x128xf32>
    %30 = arith.subf %28, %29 : vector<8x128xf32>
    %31 = arith.select %27, %25, %30 : vector<8x128xi1>, vector<8x128xf32>
    %32 = vector.extract_strided_slice %19 {offsets = [8, 0], sizes = [8, 128], strides = [1, 1]} : vector<24x128xf32> to vector<8x128xf32>
    %33 = vector.extract_strided_slice %21 {offsets = [0, 0], sizes = [8, 128], strides = [1, 1]} : vector<16x128xf32> to vector<8x128xf32>
    %34 = arith.addf %32, %33 : vector<8x128xf32>
    %35 = vector.broadcast %22 : vector<8x1xf32> to vector<8x128xf32>
    %36 = arith.addf %34, %35 : vector<8x128xf32>
    %cst_17 = arith.constant 0.000000e+00 : f32
    %37 = vector.broadcast %cst_17 : f32 to vector<8x128xf32>
    %38 = arith.cmpf ogt, %36, %37 : vector<8x128xf32>
    %39 = math.exp %36 : vector<8x128xf32>
    %cst_18 = arith.constant 1.000000e+00 : f32
    %40 = vector.broadcast %cst_18 : f32 to vector<8x128xf32>
    %41 = arith.subf %39, %40 : vector<8x128xf32>
    %42 = arith.select %38, %36, %41 : vector<8x128xi1>, vector<8x128xf32>
    %43 = vector.extract_strided_slice %19 {offsets = [16, 0], sizes = [8, 128], strides = [1, 1]} : vector<24x128xf32> to vector<8x128xf32>
    %44 = vector.extract_strided_slice %21 {offsets = [8, 0], sizes = [8, 128], strides = [1, 1]} : vector<16x128xf32> to vector<8x128xf32>
    %45 = arith.addf %43, %44 : vector<8x128xf32>
    %46 = vector.broadcast %22 : vector<8x1xf32> to vector<8x128xf32>
    %47 = arith.addf %45, %46 : vector<8x128xf32>
    %cst_19 = arith.constant 0.000000e+00 : f32
    %48 = vector.broadcast %cst_19 : f32 to vector<8x128xf32>
    %49 = arith.cmpf ogt, %47, %48 : vector<8x128xf32>
    %50 = math.exp %47 : vector<8x128xf32>
    %cst_20 = arith.constant 1.000000e+00 : f32
    %51 = vector.broadcast %cst_20 : f32 to vector<8x128xf32>
    %52 = arith.subf %50, %51 : vector<8x128xf32>
    %53 = arith.select %49, %47, %52 : vector<8x128xi1>, vector<8x128xf32>
    %54 = arith.maximumf %31, %42 : vector<8x128xf32>
    %55 = arith.maximumf %54, %53 : vector<8x128xf32>
    %c0_21 = arith.constant 0 : index
    %c0_22 = arith.constant 0 : index
    %56 = vector.load %arg6[%c0_21, %c0_22] : memref<16x8xf32, #tpu.memory_space<vmem>>, vector<16x8xf32>
    %cst_23 = arith.constant dense<0.000000e+00> : vector<16x128xf32>
    %57 = tpu.matmul %56, %55, %cst_23 {dimension_numbers = #tpu.dot_dimension_numbers<[1], [0], [0], [1], [0, 0, 1, 1], [], []>} : vector<16x8xf32>, vector<8x128xf32>, vector<16x128xf32> -> vector<16x128xf32>
    %c0_24 = arith.constant 0 : index
    %c1 = arith.constant 1 : index
    %58 = vector.load %arg10[%c0_24, %c1] : memref<16x5xf32, #tpu.memory_space<vmem>>, vector<16x1xf32>
    %59 = vector.broadcast %58 : vector<16x1xf32> to vector<16x128xf32>
    %60 = arith.addf %57, %59 : vector<16x128xf32>
    %cst_25 = arith.constant 0.000000e+00 : f32
    %61 = vector.broadcast %cst_25 : f32 to vector<16x128xf32>
    %62 = arith.cmpf ogt, %60, %61 : vector<16x128xf32>
    %63 = math.exp %60 : vector<16x128xf32>
    %cst_26 = arith.constant 1.000000e+00 : f32
    %64 = vector.broadcast %cst_26 : f32 to vector<16x128xf32>
    %65 = arith.subf %63, %64 : vector<16x128xf32>
    %66 = arith.select %62, %60, %65 : vector<16x128xi1>, vector<16x128xf32>
    %c0_27 = arith.constant 0 : index
    %c0_28 = arith.constant 0 : index
    %67 = vector.load %arg7[%c0_27, %c0_28] : memref<8x16xf32, #tpu.memory_space<vmem>>, vector<8x16xf32>
    %cst_29 = arith.constant dense<0.000000e+00> : vector<8x128xf32>
    %68 = tpu.matmul %67, %66, %cst_29 {dimension_numbers = #tpu.dot_dimension_numbers<[1], [0], [0], [1], [0, 0, 1, 1], [], []>} : vector<8x16xf32>, vector<16x128xf32>, vector<8x128xf32> -> vector<8x128xf32>
    %c0_30 = arith.constant 0 : index
    %c2 = arith.constant 2 : index
    %69 = vector.load %arg10[%c0_30, %c2] : memref<16x5xf32, #tpu.memory_space<vmem>>, vector<8x1xf32>
    %70 = vector.broadcast %69 : vector<8x1xf32> to vector<8x128xf32>
    %71 = arith.addf %68, %70 : vector<8x128xf32>
    %c0_31 = arith.constant 0 : index
    %c0_32 = arith.constant 0 : index
    %72 = vector.load %arg8[%c0_31, %c0_32] : memref<4x8xf32, #tpu.memory_space<vmem>>, vector<4x8xf32>
    %cst_33 = arith.constant dense<0.000000e+00> : vector<4x128xf32>
    %73 = tpu.matmul %72, %71, %cst_33 {dimension_numbers = #tpu.dot_dimension_numbers<[1], [0], [0], [1], [0, 0, 1, 1], [], []>} : vector<4x8xf32>, vector<8x128xf32>, vector<4x128xf32> -> vector<4x128xf32>
    %c0_34 = arith.constant 0 : index
    %c3 = arith.constant 3 : index
    %74 = vector.load %arg10[%c0_34, %c3] : memref<16x5xf32, #tpu.memory_space<vmem>>, vector<4x1xf32>
    %75 = vector.broadcast %74 : vector<4x1xf32> to vector<4x128xf32>
    %76 = arith.addf %73, %75 : vector<4x128xf32>
    %cst_35 = arith.constant 0.000000e+00 : f32
    %77 = vector.broadcast %cst_35 : f32 to vector<4x128xf32>
    %78 = arith.maximumf %76, %77 : vector<4x128xf32>
    %c0_36 = arith.constant 0 : index
    %c0_37 = arith.constant 0 : index
    %79 = vector.load %arg9[%c0_36, %c0_37] : memref<8x4xf32, #tpu.memory_space<vmem>>, vector<8x4xf32>
    %cst_38 = arith.constant dense<0.000000e+00> : vector<8x128xf32>
    %80 = tpu.matmul %79, %78, %cst_38 {dimension_numbers = #tpu.dot_dimension_numbers<[1], [0], [0], [1], [0, 0, 1, 1], [], []>} : vector<8x4xf32>, vector<4x128xf32>, vector<8x128xf32> -> vector<8x128xf32>
    %c0_39 = arith.constant 0 : index
    %c4 = arith.constant 4 : index
    %81 = vector.load %arg10[%c0_39, %c4] : memref<16x5xf32, #tpu.memory_space<vmem>>, vector<8x1xf32>
    %82 = vector.broadcast %81 : vector<8x1xf32> to vector<8x128xf32>
    %83 = arith.addf %80, %82 : vector<8x128xf32>
    %84 = math.absf %83 : vector<8x128xf32>
    %cst_40 = arith.constant 0.000000e+00 : f32
    %85 = vector.broadcast %cst_40 : f32 to vector<8x128xf32>
    %86 = arith.subf %85, %84 : vector<8x128xf32>
    %87 = math.exp %86 : vector<8x128xf32>
    %cst_41 = arith.constant 1.000000e+00 : f32
    %88 = vector.broadcast %cst_41 : f32 to vector<8x128xf32>
    %89 = arith.addf %88, %87 : vector<8x128xf32>
    %90 = tpu.reciprocal %89 {approx = true} : vector<8x128xf32> -> vector<8x128xf32>
    %91 = arith.mulf %89, %90 : vector<8x128xf32>
    %cst_42 = arith.constant 2.000000e+00 : f32
    %92 = vector.broadcast %cst_42 : f32 to vector<8x128xf32>
    %93 = arith.subf %92, %91 : vector<8x128xf32>
    %94 = arith.mulf %90, %93 : vector<8x128xf32>
    %cst_43 = arith.constant 0.000000e+00 : f32
    %95 = vector.broadcast %cst_43 : f32 to vector<8x128xf32>
    %96 = arith.cmpf oge, %83, %95 : vector<8x128xf32>
    %97 = arith.mulf %87, %94 : vector<8x128xf32>
    %98 = arith.select %96, %94, %97 : vector<8x128xi1>, vector<8x128xf32>
    %99 = arith.mulf %98, %71 : vector<8x128xf32>
    %100 = arith.addf %99, %55 : vector<8x128xf32>
    %cst_44 = arith.constant 0.000000e+00 : f32
    %101 = vector.broadcast %cst_44 : f32 to vector<8x128xf32>
    %102 = arith.cmpf ogt, %100, %101 : vector<8x128xf32>
    %103 = math.exp %100 : vector<8x128xf32>
    %cst_45 = arith.constant 1.000000e+00 : f32
    %104 = vector.broadcast %cst_45 : f32 to vector<8x128xf32>
    %105 = arith.subf %103, %104 : vector<8x128xf32>
    %106 = arith.select %102, %100, %105 : vector<8x128xi1>, vector<8x128xf32>
    %c0_46 = arith.constant 0 : index
    %c0_47 = arith.constant 0 : index
    %c0_48 = arith.constant 0 : index
    %107 = vector.load %arg11[%c0_46, %c0_47, %c0_48] : memref<1x8x128xf32, #tpu.memory_space<vmem>>, vector<1x8x128xf32>
    %108 = vector.shape_cast %107 : vector<1x8x128xf32> to vector<8x128xf32>
    %109 = vector.shape_cast %106 : vector<8x128xf32> to vector<1x8x128xf32>
    tpu.vector_store %arg11[%c0_46, %c0_47, %c0_48], %109 {strides = array<i32>} : memref<1x8x128xf32, #tpu.memory_space<vmem>>, vector<1x8x128xf32>,
    return
  }
  func.func @transform_0(%arg0: i32, %arg1: i32) -> (i32, i32, i32) {
    %c0_i32 = arith.constant 0 : i32
    %c0_i32_0 = arith.constant 0 : i32
    return %arg0, %c0_i32, %arg1 : i32, i32, i32
  }
  func.func @transform_1(%arg0: i32, %arg1: i32) -> (i32, i32, i32) {
    %c0_i32 = arith.constant 0 : i32
    %c0_i32_0 = arith.constant 0 : i32
    %c0_i32_1 = arith.constant 0 : i32
    return %arg0, %c0_i32, %c0_i32_0 : i32, i32, i32
  }
  func.func @transform_2(%arg0: i32, %arg1: i32) -> (i32, i32) {
    %c0_i32 = arith.constant 0 : i32
    %c0_i32_0 = arith.constant 0 : i32
    %c0_i32_1 = arith.constant 0 : i32
    return %c0_i32, %c0_i32_0 : i32, i32
  }
  func.func @transform_3(%arg0: i32, %arg1: i32) -> (i32, i32) {
    %c0_i32 = arith.constant 0 : i32
    %c0_i32_0 = arith.constant 0 : i32
    %c0_i32_1 = arith.constant 0 : i32
    return %c0_i32, %c0_i32_0 : i32, i32
  }
  func.func @transform_4(%arg0: i32, %arg1: i32) -> (i32, i32) {
    %c0_i32 = arith.constant 0 : i32
    %c0_i32_0 = arith.constant 0 : i32
    %c0_i32_1 = arith.constant 0 : i32
    return %c0_i32, %c0_i32_0 : i32, i32
  }
  func.func @transform_5(%arg0: i32, %arg1: i32) -> (i32, i32) {
    %c0_i32 = arith.constant 0 : i32
    %c0_i32_0 = arith.constant 0 : i32
    %c0_i32_1 = arith.constant 0 : i32
    return %c0_i32, %c0_i32_0 : i32, i32
  }
  func.func @transform_6(%arg0: i32, %arg1: i32) -> (i32, i32) {
    %c0_i32 = arith.constant 0 : i32
    %c0_i32_0 = arith.constant 0 : i32
    %c0_i32_1 = arith.constant 0 : i32
    return %c0_i32, %c0_i32_0 : i32, i32
  }
  func.func @transform_7(%arg0: i32, %arg1: i32) -> (i32, i32) {
    %c0_i32 = arith.constant 0 : i32
    %c0_i32_0 = arith.constant 0 : i32
    %c0_i32_1 = arith.constant 0 : i32
    return %c0_i32, %c0_i32_0 : i32, i32
  }
  func.func @transform_8(%arg0: i32, %arg1: i32) -> (i32, i32) {
    %c0_i32 = arith.constant 0 : i32
    %c0_i32_0 = arith.constant 0 : i32
    %c0_i32_1 = arith.constant 0 : i32
    return %c0_i32, %c0_i32_0 : i32, i32
  }
  func.func @transform_9(%arg0: i32, %arg1: i32) -> (i32, i32, i32) {
    %c0_i32 = arith.constant 0 : i32
    %c0_i32_0 = arith.constant 0 : i32
    return %arg0, %c0_i32, %arg1 : i32, i32, i32
  }
}

</mosaic_0001>

<bundles_post_ra>
// kernel: tpu_custom_call.1
= control target key start
LH: loop header
LB: loop body
LE: loop exit
PB: predicated region body
PF: predicated region fallthrough
CT: control target
= control target key end

     0   :  { %14 = vsyncpa [#allocation3], 0  ;;  %s1196_s0 = inlined_call_operand.vmem [shape: f32[2,12,128], index: 0, kind: input, shape index: {}]   ;;  %s1197_s1 = inlined_call_operand.vmem [shape: f32[2,12,1], index: 1, kind: input, shape index: {}]   ;;  %s1198_s2 = inlined_call_operand.vmem [shape: f32[24,12], index: 2, kind: input, shape index: {}]   ;;  %s1199_s3 = inlined_call_operand.vmem [shape: f32[16,12], index: 3, kind: input, shape index: {}]   ;;  %s1200_s4 = inlined_call_operand.vmem [shape: f32[16,8], index: 4, kind: input, shape index: {}]   ;;  %s1201_s5 = inlined_call_operand.vmem [shape: f32[8,16], index: 5, kind: input, shape index: {}]   ;;  %s1202_s6 = inlined_call_operand.vmem [shape: f32[4,8], index: 6, kind: input, shape index: {}]   ;;  %s1203_s7 = inlined_call_operand.vmem [shape: f32[8,4], index: 7, kind: input, shape index: {}]   ;;  %s1204_s8 = inlined_call_operand.vmem [shape: f32[16,5], index: 8, kind: input, shape index: {}]   ;;  %s1205_s9 = inlined_call_operand.hbm [shape: f32[2,8,128], index: 9, kind: output, shape index: {}]  }
   0x1   :  { %16 = vsyncpa [#allocation3 + $0x1], 0  ;;  %s1036_s30 = smov 0   ;;  %s1038_s10 = smov 0  }
   0x2   :  { %s1040_s11 = smov 0   ;;  %s1042_s12 = smov 0  }
   0x3   :  { %s1044_s13 = smov 0   ;;  %s1046_s14 = smov 0  }
   0x4 LB: > { %s779_s15 = sadd.s32 4294967295, %s978_s14   ;;  %s780_s16 = sadd.s32 4294967294, %s978_s14   ;;  %s978_s14 = sphi %s1046_s14, %s22_s14   ;;  %s974_s13 = sphi %s1044_s13, %s1212_s13   ;;  %s970_s12 = sphi %s1042_s12, %s1211_s12   ;;  %s966_s11 = sphi %s1040_s11, %s1210_s11   ;;  %s962_s10 = sphi %s1038_s10, %s1209_s10   ;;  %s958_s30 = sphi %s1036_s30, %s1208_s30  }
   0x5   : > { %s34_s17 = sadd.s32 1, %s974_s13  ;;  %s244_s18 = sadd.s32 1, %s966_s11 }
   0x6   : > { %p36_p0 = scmp.ge.s32.totalorder %s34_s17, 2  ;;  %p254_p1 = scmp.ne.s32.totalorder %s966_s11, %s962_s10 }
   0x7   : > { %p255_p2 = scmp.eq.s32.totalorder %s779_s15, 1  ;;  %p260_p3 = scmp.ne.s32.totalorder %s962_s10, %s958_s30 }
   0x8   : > { %s1214_s17 = smov (%p36_p0, %s34_s17), 0  ;;  %p261_p5 = scmp.eq.s32.totalorder %s780_s16, 1 }
   0x9   : > { %p1076_p4 = por %p255_p2, %p254_p1  ;;  %s239_s20 = ssub.s32 %s974_s13, %s1214_s17 }
   0xa   : > { %p783_p6 = scmp.ge.s32.totalorder %s978_s14, 1  ;;  %p242_p7 = scmp.eq.s32.totalorder %s239_s20, 0 }
   0xb   : > { %p1083_p8 = por %p261_p5, %p260_p3  ;;  %p319_p9 = scmp.lt.s32.totalorder %s978_s14, 3 }
   0xc   : > { %s1089_s22 = scalar_select %p242_p7, %s966_s11, %s244_s18  }
   0xd   : > { %p320_p10 = pnand %p783_p6, %p319_p9 }
   0xe   : > { %p363_p11 = scmp.lt.s32.totalorder (!%p320_p10), %s970_s12, 1  ;;  %s981_s16 = smov (!%p320_p10), 127  }
   0xf   : > { %323 = sbr.rel (%p320_p10) target bundleno = 918 (0x396), region = 56  ;;  %s360_s25 = sand.u32 (!%p320_p10), 1, %s962_s10  }
  0x10   : > { %s784_s26 = sshll.u32 (!%p320_p10), %s360_s25, 3 }
  0x14   : > { %v980_v0 = vmov 0   ;;  %v380_v1 = vlaneseq  ;;  %s364_s23 = scalar_select %p363_p11, %s970_s12, 1  ;;  %vm418_vm0 = vcmask 1043456   ;;  %v405_v5 = vld [vmem:[%s1198_s2] sm:$0xff]  ;;  %vm408_vm1 = vcmask 97280   ;;  %v406_v10 = vld [vmem:[%s1198_s2 + $0x8] sm:$0xff] }
  0x15   : > { %876 = vset.pattern.permute.xlu1 %v980_v0  ;;  %875 = vset.pattern.permute.xlu0 %v980_v0  ;;  %v407_v11 = vld [vmem:[%s1198_s2 + $0x10] sm:$0xff]  ;;  %v1115_v12 = vld [vmem:[%s1204_s8] sm:$0xff]  ;;  %v449_v20 = vld [vmem:[%s1199_s3 + $0x8] sm:$0xff]  ;;  %v982_v31 = vmov 1   ;;  %vm524_vm7 = vcmask 64512   ;;  %v983_v50 = vmov 2  }
  0x16   : > { %877 = vset.pattern.permute.xlu2 %v980_v0  ;;  %s812_s24 = sshll.u32 %s364_s23, 4  ;;  %v381_v2 = vand.u32 127, %v380_v1  ;;  %v448_v18 = vld [vmem:[%s1199_s3] sm:$0xff]  ;;  %v513_v28 = vld [vmem:[%s1204_s8 + $0x8] sm:$0xff]  ;;  %vm569_vm10 = vcmask 130048   ;;  %vm629_vm11 = vcmask 31744  }
  0x17   : > { %s370_s27 = scalar_lea.vmem %s1196_s0, %s812_s24  ;;  %s375_s15 = scalar_lea.vmem %s1197_s1, %s812_s24  ;;  %485 = vperm.xlu2 %877, %v1115_v12   ;;  %v510_v48 = vld [vmem:[%s1200_s4] sm:$0xff]  ;;  %v511_v49 = vld [vmem:[%s1200_s4 + $0x8] sm:$0xff] }
  0x18   : > { %v377_v3 = vld [vmem:[%s370_s27 + $0x8] sm:$0xf]  ;;  %v376_v4 = vld [vmem:[%s370_s27] sm:$0xff]  ;;  %vm383_vm2 = vcmp.eq.s32.totalorder %v381_v2, 0  ;;  %vm392_vm3 = vcmp.eq.s32.totalorder %v381_v2, 127  ;;  %s809_s27 = sshll.u32 %s970_s12, 3 }
  0x19   : > { %390 = vrot.lane.b32.xlu0 %v377_v3, %s981_s16  ;;  %388 = vrot.lane.b32.xlu1 %v376_v4, %s981_s16  ;;  %v379_v6 = vld [vmem:[%s375_s15 + $0x8] sm:$0xf]  ;;  %v378_v7 = vld [vmem:[%s375_s15] sm:$0xff]  ;;  %s688_s15 = scalar_lea.hbm %s1205_s9, %s809_s27  ;;  %s362_s16 = scalar_lea.vmem [#allocation2], %s784_s26 }
  0x1a   : > { %789 = vmatpush.msk.msra.mxu0 %vm418_vm0, %v377_v3  ;;  %v385_v8 = vsel %vm383_vm2, %v379_v6, 0.0  ;;  %v384_v9 = vsel %vm383_vm2, %v378_v7, 0.0  ;;  %v564_v0 = vld [vmem:[%s1201_s5] sm:$0xff]  ;;  %v984_v3 = vmov 3   ;;  %s690_s18 = sshll.u32 %s362_s16, 4  ;;  %s692_s20 = sshll.u32 %s688_s15, 4  ;;  %s691_s18 = int_to_ptr.vmem [resolvable:$true] %s690_s18  ;;  %s693_s20 = int_to_ptr.hbm [resolvable:$true] %s692_s20 }
  0x1b   : > { %v594_v2 = vld [vmem:[%s1204_s8] sm:$0xf]  ;;  %s677_s23 = scalar_lea.sflag [#allocation3], %s360_s25  ;;  %s914_s24 = sshra.s32 %s693_s20, 4  ;;  %s915_s24 = int_to_ptr.hbm [resolvable:$true] %s914_s24 }
  0x1c   : > { %437 = vmatpush.msra.mxu0 %v376_v4  ;;  %v593_v7 = vld [vmem:[%s1202_s6] sm:$0xf]  ;;  %s916_s12 = scalar_lea.hbm %s915_s24, 8  ;;  %s920_s26 = scalar_lea.hbm %s1205_s9, 16 }
  0x1d   : > { %790 = vmatmul.msk.f32.vlgmr.msra.gmra.mxu0 %vm408_vm1, %v405_v5  ;;  %p917_p12 = scmp.ne.s32.totalorder %s915_s24, %s916_s12  ;;  %p921_p1 = scmp.lt.s32.totalorder %s915_s24, %s1205_s9 }
  0x1e   : > { %p922_p2 = scmp.lt.s32.totalorder %s920_s26, %s916_s12 }
  0x1f   : > { %878 = vset.pattern.permute.xlu2 %v982_v31  ;;  %p918_p13 = pnand %p917_p12, %p1076_p4 }
  0x20   : > { %521 = vperm.xlu2 %878, %v513_v28   ;;  %p923_p3 = por %p922_p2, %p921_p1 }
  0x21   : > { %400 = vperm.xlu0 %875, %v385_v8   ;;  %395 = vperm.xlu1 %876, %v384_v9   ;;  %v985_v8 = vmov 4   ;;  %p919_p0 = pneg %p918_p13 }
  0x23   : > { %p924_p5 = pnand %p923_p3, %p919_p0 }
  0x25   : > { %791 = vmatmul.msk.f32.gmra.mxu0 %vm408_vm1, %v406_v10 }
  0x28   : > { %880 = vset.pattern.permute.xlu2 %v983_v50 }
  0x29   : > { %879 = vset.pattern.permute.xlu1 %v982_v31  ;;  %566 = vperm.xlu2 %880, %v1115_v12  }
  0x2a   : > { %516 = vperm.xlu1 %879, %v1115_v12   ;;  %881 = vset.pattern.permute.xlu0 %v984_v3 }
  0x2b   : > { %597 = vperm.xlu0 %881, %v594_v2  }
  0x2d   : > { %792 = vmatmul.msk.f32.gmra.mxu0 %vm408_vm1, %v407_v11 }
  0x32   : > { %882 = vset.pattern.permute.xlu1 %v985_v8 }
  0x33   : > { %883 = vset.pattern.permute.xlu0 %v985_v8  ;;  %626 = vperm.xlu1 %882, %v1115_v12  }
  0x71   : > { %v486_v23 = vpop.permute.xlu2 %485 }
  0x7a   : > { %v522_v54 = vpop.permute.xlu2 %521 }
  0x83   : > { %v567_v4 = vpop.permute.xlu2 %566 }
  0x8b   : > { %v391_v13 = vpop.permute.xlu0 %390  ;;  %v389_v14 = vpop.permute.xlu1 %388 }
  0x93   : > { %v401_v15 = vpop.permute.xlu0 %400  ;;  %v396_v16 = vpop.permute.xlu1 %395 }
  0x94   : > { %v404_v17 = vsel %vm392_vm3, %v401_v15, %v391_v13  ;;  %v403_v19 = vsel %vm392_vm3, %v396_v16, %v389_v14  ;;  %v624_v14 = vld [vmem:[%s1203_s7] sm:$0xff] }
  0x95   : > { %793 = vmatpush.msk.msra.mxu1 %vm418_vm0, %v404_v17 }
  0x97   : > { %474 = vmatpush.msra.mxu1 %v403_v19 }
  0x98   : > { %794 = vmatmul.msk.f32.vlgmr.msra.gmra.mxu1 %vm408_vm1, %v448_v18 }
  0x9a   : > { %v439_v21 = vpop.f32.mrf.mxu0 }
  0x9b   : > { %v488_v25 = vadd.f32 %v486_v23, %v439_v21 }
  0x9c   : > { %v517_v51 = vpop.permute.xlu1 %516 }
  0x9d   : > { %v490_v29 = vmul.f32 1.442695, %v488_v25  ;;  %vm489_vm4 = vcmp.gt.f32.partialorder %v488_v25, 0.0  ;;  %v598_v9 = vpop.permute.xlu0 %597 }
  0xa0   : > { %795 = vmatmul.msk.f32.gmra.mxu1 %vm408_vm1, %v449_v20 }
  0xa2   : > { %v442_v22 = vpop.f32.mrf.mxu0 }
  0xa5   : > { %v627_v15 = vpop.permute.xlu1 %626 }
  0xaa   : > { %v445_v32 = vpop.f32.mrf.mxu0 }
 0x115   : > { %v476_v24 = vpop.f32.mrf.mxu1 }
 0x116   : > { %v494_v26 = vadd.f32 %v476_v24, %v442_v22 }
 0x118   : > { %v495_v27 = vadd.f32 %v494_v26, %v486_v23 }
 0x11a   : > { %v497_v30 = vmul.f32 1.442695, %v495_v27  ;;  %vm496_vm5 = vcmp.gt.f32.partialorder %v495_v27, 0.0 }
 0x11c   : > { %884 = vpow2.f32 %v497_v30 }
 0x11d   : > { %v479_v33 = vpop.f32.mrf.mxu1  ;;  %886 = vpow2.f32 %v490_v29 }
 0x11e   : > { %v501_v34 = vadd.f32 %v479_v33, %v445_v32 }
 0x120   : > { %v502_v35 = vadd.f32 %v501_v34, %v486_v23 }
 0x122   : > { %v885_v36 = vpop.eup %884  ;;  %v504_v37 = vmul.f32 1.442695, %v502_v35  ;;  %vm503_vm6 = vcmp.gt.f32.partialorder %v502_v35, 0.0 }
 0x123   : > { %v887_v38 = vpop.eup %886  ;;  %v797_v39 = vadd.f32 -1.0, %v885_v36 }
 0x124   : > { %888 = vpow2.f32 %v504_v37  ;;  %v796_v40 = vadd.f32 -1.0, %v887_v38 }
 0x125   : > { %v500_v41 = vsel %vm496_vm5, %v495_v27, %v797_v39 }
 0x126   : > { %v493_v43 = vsel %vm489_vm4, %v488_v25, %v796_v40 }
 0x127   : > { %v508_v45 = vmax.f32 %v493_v43, %v500_v41 }
 0x12a   : > { %v889_v42 = vpop.eup %888 }
 0x12b   : > { %v798_v44 = vadd.f32 -1.0, %v889_v42 }
 0x12d   : > { %v507_v46 = vsel %vm503_vm6, %v502_v35, %v798_v44 }
 0x12e   : > { %v1131_v47 = vmax.f32 %v508_v45, %v507_v46 }
 0x130   : > { %546 = vmatpush.msra.mxu2 %v1131_v47 }
 0x131   : > { %799 = vmatmul.msk.f32.vlgmr.msra.gmra.mxu2 %vm524_vm7, %v510_v48 }
 0x139   : > { %800 = vmatmul.msk.f32.gmra.mxu2 %vm524_vm7, %v511_v49 }
 0x1b4   : > { %v548_v52 = vpop.f32.mrf.mxu2 }
 0x1b5   : > { %v549_v53 = vadd.f32 %v548_v52, %v517_v51 }
 0x1b7   : > { %v556_v55 = vmul.f32 1.442695, %v549_v53  ;;  %vm554_vm9 = vcmp.gt.f32.partialorder %v549_v53, 0.0 }
 0x1b9   : > { %890 = vpow2.f32 %v556_v55 }
 0x1bc   : > { %v551_v56 = vpop.f32.mrf.mxu2 }
 0x1bd   : > { %v552_v57 = vadd.f32 %v551_v56, %v522_v54 }
 0x1bf   : > { %v558_v58 = vmul.f32 1.442695, %v552_v57  ;;  %v891_v59 = vpop.eup %890  ;;  %vm555_vm8 = vcmp.gt.f32.partialorder %v552_v57, 0.0 }
 0x1c0   : > { %v801_v62 = vadd.f32 -1.0, %v891_v59 }
 0x1c1   : > { %892 = vpow2.f32 %v558_v58 }
 0x1c2   : > { %v562_v1 = vsel %vm554_vm9, %v549_v53, %v801_v62 }
 0x1c7   : > { %v893_v60 = vpop.eup %892 }
 0x1c8   : > { %v802_v61 = vadd.f32 -1.0, %v893_v60 }
 0x1ca   : > { %v563_v63 = vsel %vm555_vm8, %v552_v57, %v802_v61 }
 0x1cb   : > { %587 = vmatpush.msra.mxu3 %v563_v63 }
 0x1cd   : > { %588 = vmatpush.msra.mxu3 %v562_v1 }
 0x1ce   : > { %803 = vmatmul.msk.f32.vlgmr.msra.gmra.mxu3 %vm569_vm10, %v564_v0 }
 0x251   : > { %v590_v5 = vpop.f32.mrf.mxu3 }
 0x252   : > { %v591_v6 = vadd.f32 %v590_v5, %v567_v4 }
 0x254   : > { %618 = vmatpush.msrb.mxu3 %v591_v6 }
 0x255   : > { %804 = vmatmul.msk.f32.vlgmr.msrb.gmra.mxu3 %vm524_vm7, %v593_v7 }
 0x2d8   : > { %v620_v10 = vpop.f32.mrf.mxu3 }
 0x2d9   : > { %v621_v11 = vadd.f32 %v620_v10, %v598_v9 }
 0x2db   : > { %v623_v13 = vmax.f32 %v621_v11, 0.0 }
 0x2dd   : > { %805 = vmatpush.msk.msrb.mxu2 %vm418_vm0, %v623_v13 }
 0x2de   : > { %806 = vmatmul.msk.f32.vlgmr.msrb.gmra.mxu2 %vm629_vm11, %v624_v14 }
 0x361   : > { %v653_v16 = vpop.f32.mrf.mxu2 }
 0x362   : > { %v654_v17 = vadd.f32 %v653_v16, %v627_v15 }
 0x364   : > { %v656_v18 = vand.u32 2147483647, %v654_v17  ;;  %vm665_vm12 = vcmp.ge.f32.partialorder %v654_v17, 0.0 }
 0x366   : > { %v657_v19 = vsub.f32 0.0, %v656_v18 }
 0x368   : > { %v658_v20 = vmul.f32 1.442695, %v657_v19 }
 0x36a   : > { %894 = vpow2.f32 %v658_v20 }
 0x370   : > { %v895_v12 = vpop.eup %894 }
 0x371   : > { %v660_v21 = vadd.f32 1.0, %v895_v12 }
 0x373   : > { %896 = vrcp.f32 %v660_v21 }
 0x379   : > { %v897_v22 = vpop.eup %896 }
 0x37a   : > { %v662_v23 = vmul.f32 %v897_v22, %v660_v21 }
 0x37c   : > { %v663_v24 = vsub.f32 2.0, %v662_v23 }
 0x37e   : > { %v664_v25 = vmul.f32 %v897_v22, %v663_v24 }
 0x380   : > { %v666_v26 = vmul.f32 %v895_v12, %v664_v25 }
 0x382   : > { %v667_v27 = vsel %vm665_vm12, %v664_v25, %v666_v26 }
 0x383   : > { %v668_v28 = vmul.f32 %v667_v27, %v591_v6 }
 0x385   : > { %v669_v29 = vadd.f32 %v668_v28, %v1131_v47 }
 0x387   : > { %v671_v30 = vmul.f32 1.442695, %v669_v29  ;;  %vm670_vm13 = vcmp.gt.f32.partialorder %v669_v29, 0.0 }
 0x389   : > { %898 = vpow2.f32 %v671_v30 }
 0x38f   : > { %v899_v31 = vpop.eup %898 }
 0x390   : > { %v807_v32 = vadd.f32 -1.0, %v899_v31 }
 0x392   : > { %v674_v33 = vsel %vm670_vm13, %v669_v29, %v807_v32 }
 0x393   : > { %675 = vst [vmem:[%s362_s16] sm:$0xff] %v674_v33 }
 0x394   : > { %927 = shalt.err (!%p924_p5)
}
 0x395   : > { %814 = dma.vmem_to_hbm [thread:$0]  (%p1076_p4), %s691_s18, 128, %s693_s20, %s677_s23  }
 0x396 PF: > { %p820_p6 = scmp.ge.s32.totalorder %s978_s14, 2  ;;  %s704_s25 = sand.u32 1, %s958_s30  }
 0x397   : > { %s705_s16 = scalar_lea.sflag [#allocation3], %s704_s25 }
 0x398   : > { %p817_p7 = pnand %p820_p6, %p1083_p8 }
 0x39a   : > { %p818_p9 = pneg %p817_p7 }
 0x39c   : > { %953 = dma.done.wait (%p818_p9), %s705_s16, 128  }
 0x39d   : > { %955 = vsyncadd (%p818_p9), %s705_s16, 4294967168  ;;  %s22_s14 = sadd.s32 1, %s978_s14   ;;  %s1208_s30 = smov %s962_s10 }
 0x39e   : > { %p19_p10 = scmp.ge.s32.totalorder %s22_s14, 4   ;;  %s1209_s10 = smov %s966_s11 }
 0x39f   : > { %s1210_s11 = smov %s1089_s22  ;;  %s1211_s12 = smov %s974_s13 }
 0x3a0   : > { %s1212_s13 = smov %s1214_s17  ;;  %21 = sbr.rel (!%p19_p10) target bundleno = 4 (0x4), region = 94 }
 0x3a5   :  { %711 = vsyncpa [#allocation3], 1 }
 0x3a6   :  { %713 = vsyncpa [#allocation3 + $0x1], 1 }

</bundles_post_ra>
